<compile_context>
chip_gen: v7x
topology: tpu7x:2x2x1
jax: 0.10.0
libtpu: 0.0.40
codegen_flags: <defaults>
</compile_context>

<pallas_src>
from functools import lru_cache
from typing import NamedTuple, Optional

import jax
import jax.numpy as jnp
from jax.experimental import pallas as pl
from jax.experimental.pallas import tpu as pltpu

MNIST_MEAN = 0.1307
MNIST_SIGMA = 0.3081


@lru_cache(maxsize=None)
def _pad_unit() -> int:
    """MXU-matched padding unit: 256 on v6e/v7x (2x256^2 MXU), 128 otherwise."""
    try:
        kind = jax.devices()[0].device_kind.lower()
    except Exception:
        return 128
    return 256 if any(tag in kind for tag in ("v6", "v7", "7x")) else 128


def _round_up(x: int, m: int) -> int:
    return ((x + m - 1) // m) * m


def _pad_constraint_T(mat) -> jax.Array:
    """(out, in+1) relative-constraint matrix -> transposed, zero-padded,
    bias-row-augmented form of shape (rup(in+1,U), rup(out+1,U)).

      padded[k, r] = mat[r, k]   for r < out, k < in+1
      padded[in, out] = 1.0      (the bias row the torch code concatenates per
                                  backsub step, folded in once here)
      everything else = 0.0      (mathematically inert padding)
    """
    unit = _pad_unit()
    mat = jnp.asarray(mat, jnp.float32)
    out_f, in_p1 = mat.shape
    k_pad = _round_up(in_p1, unit)
    r_pad = _round_up(out_f + 1, unit)
    p = jnp.zeros((k_pad, r_pad), jnp.float32)
    p = p.at[:in_p1, :out_f].set(mat.T)
    p = p.at[in_p1 - 1, out_f].set(1.0)
    return p


class _LayerEntry(NamedTuple):
    padded_lb_T: jax.Array             # (K, R)
    padded_ub_T: Optional[jax.Array]   # None => tied (ub constraint is lb constraint)
    out_features: int


# ---------------------------------------------------------------------------
# Fused back-substitution kernel (one launch for the whole chain)
# ---------------------------------------------------------------------------
def _make_backsub_kernel(tied_flags):
    """Build the fused back-substitution kernel body.

    Ref order: per layer (deepest first) one padded constraint ref if tied,
    two if untied; then B / B_rev (sublane-aligned (8, K1) input-bound rows:
    B = [lb0_aug; ub0_aug; 0...], B_rev = [ub0_aug; lb0_aug; 0...]); then
    out_ref of shape (8, tile_R): row 0 = lb, row 1 = ub, rows 2..7 = 0.
    """
    n_layer_refs = sum(1 if t else 2 for t in tied_flags)
    hp = jax.lax.Precision.HIGHEST

    def kernel(*refs):
        layer_refs = refs[:n_layer_refs]
        b_ref = refs[n_layer_refs]
        b_rev_ref = refs[n_layer_refs + 1]
        out_ref = refs[n_layer_refs + 2]

        def mm(a, b):
            return jnp.dot(a, b, preferred_element_type=jnp.float32, precision=hp)

        # Deepest layer's relative constraints become the running bound.
        # cur_ub is None while the running bound is tied (lb == ub exactly).
        idx = 0
        cur_lb = layer_refs[idx][...]
        if tied_flags[0]:
            cur_ub = None
            idx += 1
        else:
            cur_ub = layer_refs[idx + 1][...]
            idx += 2

        # Intermediate back-substitution steps (trace-time unrolled, MXU).
        # No concatenates / slices: every step is whole-tile matmuls, with the
        # negative part carried as min(x,0) and the sign folded into the sum.
        for tied in tied_flags[1:]:
            if tied:
                # prev_lb == prev_ub = P  =>  the interval split collapses
                # exactly: new = P @ cur  (single f32 MXU matmul per bound).
                p_t = layer_refs[idx][...]
                idx += 1
                new_lb = mm(p_t, cur_lb)
                new_ub = None if cur_ub is None else mm(p_t, cur_ub)
            else:
                plb_t = layer_refs[idx][...]
                pub_t = layer_refs[idx + 1][...]
                idx += 2
                cub = cur_lb if cur_ub is None else cur_ub
                new_lb = (mm(plb_t, jnp.maximum(cur_lb, 0.0))
                          + mm(pub_t, jnp.minimum(cur_lb, 0.0)))
                new_ub = (mm(pub_t, jnp.maximum(cub, 0.0))
                          + mm(plb_t, jnp.minimum(cub, 0.0)))
            cur_lb, cur_ub = new_lb, new_ub

        # Final step against the (untied) input bounds: two small MXU matmuls
        # against the sublane-aligned bound rows -> lane-dense (8, R) output.
        b = b_ref[...]          # row 0 = lb0_aug, row 1 = ub0_aug
        b_rev = b_rev_ref[...]  # row 0 = ub0_aug, row 1 = lb0_aug
        if cur_ub is None:
            out_ref[...] = (mm(b, jnp.maximum(cur_lb, 0.0))
                            + mm(b_rev, jnp.minimum(cur_lb, 0.0)))
        else:
            r_lb = (mm(b, jnp.maximum(cur_lb, 0.0))
                    + mm(b_rev, jnp.minimum(cur_lb, 0.0)))      # row 0 = new_lb
            r_ub = (mm(b, jnp.maximum(cur_ub, 0.0))
                    + mm(b_rev, jnp.minimum(cur_ub, 0.0)))      # row 1 = new_ub
            rows = jax.lax.broadcasted_iota(jnp.int32, r_lb.shape, 0)
            out_ref[...] = jnp.where(rows < 1, r_lb, r_ub)

    return kernel


# ---------------------------------------------------------------------------
# DP_object / DeepPLinear (JAX re-implementation, fused Pallas backsub)
# ---------------------------------------------------------------------------
class DPObjectPallas:
    """Port of DP_object: same bookkeeping, but backsub() runs the whole
    back-substitution chain in a single fused Pallas kernel launch."""

    def __init__(self, inputs, eps, mean=MNIST_MEAN, sigma=MNIST_SIGMA):
        unit = _pad_unit()
        x = jnp.asarray(inputs, jnp.float32)
        n = x.shape[0]
        lb = jnp.clip(x - eps, 0.0, 1.0)
        ub = jnp.clip(x + eps, 0.0, 1.0)
        # Normalization (MNIST constants; the torch Normalization module is not
        # provided) + Flatten in plain jnp: one vreg of elementwise work is not
        # worth a kernel launch.
        lb = ((lb - mean) / sigma).reshape(n, -1)
        ub = ((ub - mean) / sigma).reshape(n, -1)
        lb_col = lb.reshape(-1, 1)
        ub_col = ub.reshape(-1, 1)
        self.rel_bounds = [(lb_col, ub_col)]
        self.abs_bounds = [(lb_col, ub_col)]

        # Augmented input bounds packed as sublane-aligned (8, K1) rows so the
        # final backsub step is two lane-dense MXU matmuls (no (K,1) columns,
        # no cross-lane broadcast): B = [lb0;ub0;0...], B_rev = [ub0;lb0;0...].
        f = lb_col.shape[0]
        k_pad = _round_up(f + 1, unit)
        self._num_inputs = f
        lb0 = jnp.zeros((k_pad,), jnp.float32).at[:f].set(lb_col[:, 0]).at[f].set(1.0)
        ub0 = jnp.zeros((k_pad,), jnp.float32).at[:f].set(ub_col[:, 0]).at[f].set(1.0)
        self._b = jnp.zeros((8, k_pad), jnp.float32).at[0].set(lb0).at[1].set(ub0)
        self._b_rev = jnp.zeros((8, k_pad), jnp.float32).at[0].set(ub0).at[1].set(lb0)
        self._layer_entries = []

    def append_relbound(self, rel_bound, *, padded_T=None, out_features=None):
        self.rel_bounds.append(rel_bound)
        lb_mat, ub_mat = rel_bound
        if out_features is None:
            out_features = int(lb_mat.shape[0])
        if padded_T is not None:                       # pre-padded by the layer
            entry = _LayerEntry(padded_T, None, out_features)
        elif lb_mat is ub_mat:                         # tied constraints
            entry = _LayerEntry(_pad_constraint_T(lb_mat), None, out_features)
        else:                                          # generic untied fallback
            entry = _LayerEntry(_pad_constraint_T(lb_mat),
                                _pad_constraint_T(ub_mat), out_features)
        self._layer_entries.append(entry)

    def backsub(self):
        if len(self.rel_bounds) == 1:
            return self.rel_bounds[0]

        entries = self._layer_entries
        out_f = entries[-1].out_features
        r_last = int(entries[-1].padded_lb_T.shape[1])
        unit = _pad_unit()
        tile_r = unit if r_last > unit else r_last
        n_tiles = r_last // tile_r

        # Assemble operands deepest-layer-first.  The deepest layer's output
        # columns are the tiled, "parallel" grid axis (independent columns ->
        # free 2x on v7x's two TensorCores); every other operand is a full,
        # grid-invariant block.
        operands, tied_flags, in_specs = [], [], []
        for pos, e in enumerate(reversed(entries)):
            if pos == 0:
                def make_spec(shape):
                    return pl.BlockSpec((shape[0], tile_r), lambda j: (0, j))
            else:
                def make_spec(shape):
                    return pl.BlockSpec(tuple(shape), lambda j: (0, 0))
            if e.padded_ub_T is None:
                operands.append(e.padded_lb_T)
                in_specs.append(make_spec(e.padded_lb_T.shape))
                tied_flags.append(True)
            else:
                operands.extend([e.padded_lb_T, e.padded_ub_T])
                in_specs.extend([make_spec(e.padded_lb_T.shape),
                                 make_spec(e.padded_ub_T.shape)])
                tied_flags.append(False)
        operands.extend([self._b, self._b_rev])
        in_specs.extend([pl.BlockSpec(tuple(self._b.shape), lambda j: (0, 0)),
                         pl.BlockSpec(tuple(self._b_rev.shape), lambda j: (0, 0))])
        out_spec = pl.BlockSpec((8, tile_r), lambda j: (0, j))

        # Advisory cost estimate + explicit VMEM budget.
        total_in_bytes = sum(int(op.size) * int(op.dtype.itemsize) for op in operands)
        out_bytes = 8 * r_last * 4
        flops = 0
        for e in entries[:-1]:
            k, r = e.padded_lb_T.shape
            n_mm = 1 if e.padded_ub_T is None else 2
            flops += 2 * int(k) * int(r) * r_last * n_mm
        flops += 2 * 2 * 8 * int(self._b.shape[1]) * r_last
        cost = pl.CostEstimate(flops=int(flops), transcendentals=0,
                               bytes_accessed=int(total_in_bytes + out_bytes))

        max_k = max(int(op.shape[0]) for op in operands)
        live_tmp_bytes = 4 * max_k * tile_r * 4   # a few live (K, tile_r) f32 temps
        vmem_limit = int(min(64 << 20,
                             max(16 << 20,
                                 2 * total_in_bytes + 2 * out_bytes
                                 + live_tmp_bytes + (4 << 20))))

        # TODO(synk): for chains whose padded matrices exceed this VMEM budget,
        # switch the layer operands to memory_space=pl.ANY with manual
        # double-buffered make_async_copy prefetch (2 matrices resident max).
        out = pl.pallas_call(
            _make_backsub_kernel(tuple(tied_flags)),
            out_shape=jax.ShapeDtypeStruct((8, r_last), jnp.float32),
            grid_spec=pltpu.PrefetchScalarGridSpec(
                num_scalar_prefetch=0,
                grid=(n_tiles,),
                in_specs=in_specs,
                out_specs=out_spec,
            ),
            compiler_params=pltpu.CompilerParams(
                dimension_semantics=("parallel",),
                vmem_limit_bytes=vmem_limit),
            cost_estimate=cost,
        )(*operands)

        current_lb = out[0, :out_f].reshape(-1, 1)
        current_ub = out[1, :out_f].reshape(-1, 1)
        self.abs_bounds.append((current_lb, current_ub))
        return current_lb, current_ub


class DeepPLinearPallas:
    """Mirror of the PyTorch DeepPLinear module (forward = append rel bound)."""

    def __init__(self, weight, bias):
        self.weight = jnp.asarray(weight, jnp.float32)       # (out, in)
        self.bias = jnp.asarray(bias, jnp.float32)           # (out,)
        self.out_features = int(self.weight.shape[0])
        self.in_features = int(self.weight.shape[1])
        constr = jnp.concatenate([self.weight, self.bias[:, None]], axis=1)
        self.rel_bound = (constr, constr)
        # Padded / transposed / bias-row-augmented form built ONCE here so the
        # backsub kernel never concatenates or re-lays-out anything per call.
        self._padded_T = _pad_constraint_T(constr)

    def forward(self, x: DPObjectPallas):
        # Forward itself is pure list bookkeeping (no math); the numeric work
        # it enables runs in the fused backsub kernel above.
        x.append_relbound(self.rel_bound, padded_T=self._padded_T,
                          out_features=self.out_features)
        return x

    __call__ = forward


# ---------------------------------------------------------------------------
# Pure-JAX reference: faithful transcription of DP_object.backsub
# ---------------------------------------------------------------------------
def _reference_backsub(rel_bounds):
    hp = jax.lax.Precision.HIGHEST
    current_lb, current_ub = rel_bounds[-1]
    for i in range(len(rel_bounds) - 1, 0, -1):
        prev_lb, prev_ub = rel_bounds[i - 1]
        bias_row = jnp.zeros((1, prev_lb.shape[-1]), jnp.float32).at[0, -1].set(1.0)
        plb = jnp.concatenate([prev_lb, bias_row], axis=0)
        pub = jnp.concatenate([prev_ub, bias_row], axis=0)
        wp = jnp.maximum(current_lb, 0.0)
        wn = jnp.maximum(-current_lb, 0.0)
        new_lb = jnp.matmul(wp, plb, precision=hp) - jnp.matmul(wn, pub, precision=hp)
        wp = jnp.maximum(current_ub, 0.0)
        wn = jnp.maximum(-current_ub, 0.0)
        new_ub = jnp.matmul(wp, pub, precision=hp) - jnp.matmul(wn, plb, precision=hp)
        current_lb, current_ub = new_lb, new_ub
    return current_lb, current_ub


if __name__ == "__main__":
    key = jax.random.PRNGKey(0)
    k_x, k_w1, k_b1, k_w2, k_b2 = jax.random.split(key, 5)

    # Small MNIST-like single image: NCHW = (1, 1, 8, 8) -> 64 flattened features.
    inputs = jax.random.uniform(k_x, (1, 1, 8, 8), dtype=jnp.float32)
    eps = 0.1

    w1 = 0.1 * jax.random.normal(k_w1, (32, 64), dtype=jnp.float32)
    b1 = 0.1 * jax.random.normal(k_b1, (32,), dtype=jnp.float32)
    w2 = 0.1 * jax.random.normal(k_w2, (16, 32), dtype=jnp.float32)
    b2 = 0.1 * jax.random.normal(k_b2, (16,), dtype=jnp.float32)

    layer1 = DeepPLinearPallas(w1, b1)
    layer2 = DeepPLinearPallas(w2, b2)

    dp = DPObjectPallas(inputs, eps)

    # --- layer 1 forward + backsub: single-layer chain, one fused launch ---
    dp = layer1.forward(dp)
    dp.backsub()
    lb1, ub1 = dp.abs_bounds[-1]
    lb1 = jax.block_until_ready(lb1)
    ub1 = jax.block_until_ready(ub1)
    lb1_ref, ub1_ref = _reference_backsub(dp.rel_bounds)
    assert lb1.shape == (32, 1) and ub1.shape == (32, 1)
    assert jnp.allclose(lb1, lb1_ref, atol=1e-3, rtol=1e-3)
    assert jnp.allclose(ub1, ub1_ref, atol=1e-3, rtol=1e-3)
    assert bool(jnp.all(lb1 <= ub1 + 1e-5))

    # --- layer 2 forward + backsub: two-layer chain, still ONE fused launch;
    #     the intermediate tied step is a single f32 MXU matmul. ---
    dp = layer2.forward(dp)
    dp.backsub()
    lb2, ub2 = dp.abs_bounds[-1]
    lb2 = jax.block_until_ready(lb2)
    ub2 = jax.block_until_ready(ub2)
    lb2_ref, ub2_ref = _reference_backsub(dp.rel_bounds)
    assert lb2.shape == (16, 1) and ub2.shape == (16, 1)
    assert jnp.allclose(lb2, lb2_ref, atol=1e-3, rtol=1e-3)
    assert jnp.allclose(ub2, ub2_ref, atol=1e-3, rtol=1e-3)
    assert bool(jnp.all(lb2 <= ub2 + 1e-5))

    print("KERNEL_OK")
</pallas_src>

<mosaic_0001>
module attributes {stable_mosaic.version = 11 : i64} {
  func.func @kernel(%arg0: i32, %arg1: memref<128x128xf32, #tpu.memory_space<vmem>>, %arg2: memref<8x128xf32, #tpu.memory_space<vmem>>, %arg3: memref<8x128xf32, #tpu.memory_space<vmem>>, %arg4: memref<8x128xf32, #tpu.memory_space<vmem>>) attributes {dimension_semantics = [#tpu.dimension_semantics<parallel>], iteration_bounds = array<i64: 1>, scalar_prefetch = 0 : i64, scratch_operands = 0 : i64, tpu.core_type = #tpu.core_type<tc>, window_params = [{transform_indices = @transform_0, window_bounds = array<i64: 128, 128>}, {pipeline_mode = #tpu.pipeline_mode<synchronous>, transform_indices = @transform_1, window_bounds = array<i64: 8, 128>}, {pipeline_mode = #tpu.pipeline_mode<synchronous>, transform_indices = @transform_2, window_bounds = array<i64: 8, 128>}, {transform_indices = @transform_3, window_bounds = array<i64: 8, 128>}]} {
    %c0 = arith.constant 0 : index
    %c0_0 = arith.constant 0 : index
    %0 = vector.load %arg1[%c0, %c0_0] : memref<128x128xf32, #tpu.memory_space<vmem>>, vector<128x128xf32>
    %c0_1 = arith.constant 0 : index
    %c0_2 = arith.constant 0 : index
    %1 = vector.load %arg2[%c0_1, %c0_2] : memref<8x128xf32, #tpu.memory_space<vmem>>, vector<8x128xf32>
    %c0_3 = arith.constant 0 : index
    %c0_4 = arith.constant 0 : index
    %2 = vector.load %arg3[%c0_3, %c0_4] : memref<8x128xf32, #tpu.memory_space<vmem>>, vector<8x128xf32>
    %cst = arith.constant 0.000000e+00 : f32
    %3 = vector.broadcast %cst : f32 to vector<128x128xf32>
    %4 = arith.maximumf %0, %3 : vector<128x128xf32>
    %cst_5 = arith.constant dense<0.000000e+00> : vector<8x128xf32>
    %5 = tpu.matmul %1, %4, %cst_5 {dimension_numbers = #tpu.dot_dimension_numbers<[1], [0], [0], [1], [0, 0, 1, 1], [], []>, precision = #tpu.contract_precision<fp32>} : vector<8x128xf32>, vector<128x128xf32>, vector<8x128xf32> -> vector<8x128xf32>
    %cst_6 = arith.constant 0.000000e+00 : f32
    %6 = vector.broadcast %cst_6 : f32 to vector<128x128xf32>
    %7 = arith.minimumf %0, %6 : vector<128x128xf32>
    %cst_7 = arith.constant dense<0.000000e+00> : vector<8x128xf32>
    %8 = tpu.matmul %2, %7, %cst_7 {dimension_numbers = #tpu.dot_dimension_numbers<[1], [0], [0], [1], [0, 0, 1, 1], [], []>, precision = #tpu.contract_precision<fp32>} : vector<8x128xf32>, vector<128x128xf32>, vector<8x128xf32> -> vector<8x128xf32>
    %9 = arith.addf %5, %8 : vector<8x128xf32>
    %c0_8 = arith.constant 0 : index
    %c0_9 = arith.constant 0 : index
    %10 = vector.load %arg4[%c0_8, %c0_9] : memref<8x128xf32, #tpu.memory_space<vmem>>, vector<8x128xf32>
    tpu.vector_store %arg4[%c0_8, %c0_9], %9 {strides = array<i32>} : memref<8x128xf32, #tpu.memory_space<vmem>>, vector<8x128xf32>,
    return
  }
  func.func @transform_0(%arg0: i32) -> (i32, i32) {
    %c0_i32 = arith.constant 0 : i32
    %c0_i32_0 = arith.constant 0 : i32
    return %c0_i32, %arg0 : i32, i32
  }
  func.func @transform_1(%arg0: i32) -> (i32, i32) {
    %c0_i32 = arith.constant 0 : i32
    %c0_i32_0 = arith.constant 0 : i32
    %c0_i32_1 = arith.constant 0 : i32
    return %c0_i32, %c0_i32_0 : i32, i32
  }
  func.func @transform_2(%arg0: i32) -> (i32, i32) {
    %c0_i32 = arith.constant 0 : i32
    %c0_i32_0 = arith.constant 0 : i32
    %c0_i32_1 = arith.constant 0 : i32
    return %c0_i32, %c0_i32_0 : i32, i32
  }
  func.func @transform_3(%arg0: i32) -> (i32, i32) {
    %c0_i32 = arith.constant 0 : i32
    %c0_i32_0 = arith.constant 0 : i32
    return %c0_i32, %arg0 : i32, i32
  }
}

</mosaic_0001>

<bundles_post_ra>
// kernel: tpu_custom_call.1
= control target key start
LH: loop header
LB: loop body
LE: loop exit
PB: predicated region body
PF: predicated region fallthrough
CT: control target
= control target key end

     0   :  { %8 = vsyncpa [#allocation3], 0  ;;  %s3075_s0 = inlined_call_operand.hbm [shape: f32[128,128], index: 0, kind: input, shape index: {}]   ;;  %s3076_s1 = inlined_call_operand.hbm [shape: f32[8,128], index: 1, kind: input, shape index: {}]   ;;  %s3077_s2 = inlined_call_operand.hbm [shape: f32[8,128], index: 2, kind: input, shape index: {}]   ;;  %s3078_s3 = inlined_call_operand.hbm [shape: f32[8,128], index: 3, kind: output, shape index: {}]  }
   0x1   :  { %9 = vsyncpa [#allocation6], 0 }
   0x2   :  { %10 = vsyncpa [#allocation4], 0  ;;  %s2437_s12 = smov [#allocation5]   ;;  %s2438_s14 = smov [#allocation2]  }
   0x3   :  { %s29_s13 = sshll.u32 %s2437_s12, 4  ;;  %s16_s15 = sshll.u32 %s2438_s14, 4  ;;  %s30_s13 = int_to_ptr.vmem [resolvable:$true] %s29_s13  ;;  %s2466_s15 = int_to_ptr.vmem [resolvable:$true] %s16_s15 }
   0x4   :  { %s2343_s18 = scalar_lea.hbm %s3076_s1, 128 }
   0x5   :  { %p2344_p0 = scmp.ne.s32.totalorder %s3076_s1, %s2343_s18  ;;  %p2347_p1 = scmp.lt.u32.totalorder %s2343_s18, %s3076_s1 }
   0x7   :  { %p2349_p2 = pnand %p2347_p1, %p2344_p0 }
   0x9   :  { %2352 = shalt.err (!%p2349_p2)
}
   0xa   :  { %s2353_s23 = scalar_lea.vmem %s30_s13, 128  ;;  %p2358_p4 = scmp.lt.s32.totalorder %s30_s13, %s30_s13 }
   0xb   :  { %p2354_p3 = scmp.ne.s32.totalorder %s30_s13, %s2353_s23  ;;  %p2359_p5 = scmp.lt.s32.totalorder %s2353_s23, %s2353_s23 }
   0xd   :  { %p2360_p6 = por %p2359_p5, %p2358_p4 }
   0xf   :  { %p2361_p7 = pnand %p2360_p6, %p2354_p3 }
  0x11   :  { %2364 = shalt.err (!%p2361_p7)
}
  0x12   :  { %32 = dma.hbm_to_vmem [thread:$0]  %s3076_s1, 128, %s30_s13, [#allocation6]  }
  0x13   :  { %s2365_s28 = scalar_lea.hbm %s3075_s0, 2048 }
  0x14   :  { %p2366_p8 = scmp.ne.s32.totalorder %s3075_s0, %s2365_s28  ;;  %p2369_p9 = scmp.lt.u32.totalorder %s2365_s28, %s3075_s0 }
  0x16   :  { %p2371_p10 = pnand %p2369_p9, %p2366_p8 }
  0x18   :  { %2374 = shalt.err (!%p2371_p10)
}
  0x19   :  { %s2375_s6 = scalar_lea.vmem %s2466_s15, 2048  ;;  %p2380_p12 = scmp.lt.s32.totalorder %s2466_s15, %s2466_s15 }
  0x1a   :  { %p2376_p11 = scmp.ne.s32.totalorder %s2466_s15, %s2375_s6  ;;  %p2381_p13 = scmp.lt.s32.totalorder %s2375_s6, %s2375_s6 }
  0x1c   :  { %p2382_p0 = por %p2381_p13, %p2380_p12 }
  0x1e   :  { %p2383_p1 = pnand %p2382_p0, %p2376_p11 }
  0x20   :  { %2386 = shalt.err (!%p2383_p1)
}
  0x21   :  { %s2439_s1 = smov 128   ;;  %s2440_s7 = smov 8  }
  0x22   :  { %22 = dma.hbm_to_vmem [thread:$0]  %s3075_s0, 2048, %s2466_s15, [#allocation3], %s2439_s1, %s2439_s1, %s2440_s7  }
  0x23   :  { %s2441_s10 = smov [#allocation7]   ;;  %s2387_s14 = scalar_lea.hbm %s3077_s2, 128 }
  0x24   :  { %s39_s11 = sshll.u32 %s2441_s10, 4  ;;  %p2388_p2 = scmp.ne.s32.totalorder %s3077_s2, %s2387_s14  ;;  %s40_s11 = int_to_ptr.vmem [resolvable:$true] %s39_s11 }
  0x25   :  { %p2391_p3 = scmp.lt.u32.totalorder %s2387_s14, %s3077_s2 }
  0x27   :  { %p2393_p4 = pnand %p2391_p3, %p2388_p2 }
  0x29   :  { %2396 = shalt.err (!%p2393_p4)
}
  0x2a   :  { %s2397_s20 = scalar_lea.vmem %s40_s11, 128  ;;  %p2402_p6 = scmp.lt.s32.totalorder %s40_s11, %s40_s11 }
  0x2b   :  { %p2398_p5 = scmp.ne.s32.totalorder %s40_s11, %s2397_s20  ;;  %p2403_p7 = scmp.lt.s32.totalorder %s2397_s20, %s2397_s20 }
  0x2d   :  { %p2404_p8 = por %p2403_p7, %p2402_p6 }
  0x2f   :  { %p2405_p9 = pnand %p2404_p8, %p2398_p5 }
  0x31   :  { %2408 = shalt.err (!%p2405_p9)
}
  0x32   :  { %42 = dma.hbm_to_vmem [thread:$0]  %s3077_s2, 128, %s40_s11, [#allocation6]  }
  0x33   :  { %2431 = dma.done.wait [#allocation3], 2048  }
  0x34   :  { %2432 = vsyncadd [#allocation3], 4294965248 }
  0x35   :  { %2433 = dma.done.wait [#allocation6], 256  }
  0x36   :  { %2434 = vsyncadd [#allocation6], 4294967040  ;;  %v3086_v0 = vmov 0.0|0.0   ;;  %vm2443_vm0 = vmmov 0   ;;  %v3079_v1 = vmov 0.0   ;;  %v52_v2 = vld [vmem:[#allocation2] sm:$0xff] }
  0x37   :  { %2025 = vmatprep.subr.bf16.mxu1 %v3086_v0  ;;  %2169 = vmatprep.subr.bf16.mxu0 %v3086_v0  ;;  %v53_v3 = vld [vmem:[#allocation2 + $0x8] sm:$0xff]  ;;  %v54_v4 = vld [vmem:[#allocation2 + $0x10] sm:$0xff]  ;;  %v86_v5 = vmin.f32 %v52_v2, 0.0  ;;  %v70_v7 = vmax.f32 %v52_v2, 0.0  ;;  %v55_v9 = vld [vmem:[#allocation2 + $0x18] sm:$0xff]  ;;  %s2445_s2 = smov [#allocation8]  }
  0x38   :  { %1637 = vmatprep.mubr.msk.f32.mxu1 %vm2443_vm0, %v3079_v1  ;;  %1847 = vmatprep.mubr.msk.f32.mxu0 %vm2443_vm0, %v3079_v1  ;;  %v87_v6 = vmin.f32 %v53_v3, 0.0  ;;  %v71_v8 = vmax.f32 %v53_v3, 0.0  ;;  %v88_v10 = vmin.f32 %v54_v4, 0.0  ;;  %v89_v11 = vmin.f32 %v55_v9, 0.0  ;;  %v56_v22 = vld [vmem:[#allocation2 + $0x20] sm:$0xff]  ;;  %v57_v26 = vld [vmem:[#allocation2 + $0x28] sm:$0xff] }
  0x39   :  { %v72_v12 = vmax.f32 %v54_v4, 0.0  ;;  %v73_v13 = vmax.f32 %v55_v9, 0.0  ;;  %v103_v14 = vand.u32 4294901760, %v86_v5  ;;  %v744_v16 = vand.u32 4294901760, %v70_v7  ;;  %v58_v31 = vld [vmem:[#allocation2 + $0x30] sm:$0xff]  ;;  %v2529_v32 = vld [vmem:[#allocation2 + $0x38] sm:$0xff] }
  0x3a   :  { %v106_v15 = vand.u32 4294901760, %v87_v6  ;;  %v747_v17 = vand.u32 4294901760, %v71_v8  ;;  %v109_v18 = vand.u32 4294901760, %v88_v10  ;;  %v112_v19 = vand.u32 4294901760, %v89_v11  ;;  %v60_v57 = vld [vmem:[#allocation2 + $0x40] sm:$0xff]  ;;  %v61_v58 = vld [vmem:[#allocation2 + $0x48] sm:$0xff] }
  0x3b   :  { %v750_v20 = vand.u32 4294901760, %v72_v12  ;;  %v753_v21 = vand.u32 4294901760, %v73_v13  ;;  %v2517_v24 = vsub.f32 %v86_v5, %v103_v14  ;;  %v2523_v28 = vsub.f32 %v70_v7, %v744_v16  ;;  %v62_v63 = vld [vmem:[#allocation2 + $0x50] sm:$0xff]  ;;  %v63_v2 = vld [vmem:[#allocation2 + $0x58] sm:$0xff]  ;;  %s1391_s21 = sshll.u32 %s2445_s2, 4  ;;  %s1392_s21 = int_to_ptr.vmem [resolvable:$true] %s1391_s21 }
  0x3c   :  { %v2515_v23 = vpack.c.bf16 %v106_v15, %v103_v14  ;;  %v2519_v25 = vpack.c.bf16 %v747_v17, %v744_v16  ;;  %v2521_v27 = vsub.f32 %v87_v6, %v106_v15  ;;  %v2525_v29 = vsub.f32 %v71_v8, %v747_v17  ;;  %v64_v15 = vld [vmem:[#allocation2 + $0x60] sm:$0xff]  ;;  %s2409_s22 = scalar_lea.vmem %s1392_s21, 128  ;;  %p2414_p11 = scmp.lt.s32.totalorder %s1392_s21, %s1392_s21 }
  0x3d   :  { %v2527_v30 = vpack.c.bf16 %v112_v19, %v109_v18  ;;  %v2533_v33 = vsub.f32 %v88_v10, %v109_v18  ;;  %v2535_v34 = vsub.f32 %v89_v11, %v112_v19  ;;  %v2537_v35 = vpack.c.bf16 %v753_v21, %v750_v20  ;;  %p2410_p10 = scmp.ne.s32.totalorder %s1392_s21, %s2409_s22  ;;  %p2415_p12 = scmp.lt.s32.totalorder %s2409_s22, %s2409_s22 }
  0x3e   :  { %3147 = vst [vmem:[#allocation12_spill] sm:$0xff] %v2515_v23  ;;  %3148 = vst [vmem:[#allocation13_spill] sm:$0xff] %v2519_v25  ;;  %2027 = vmatpush3.bf16.msra.mxu1 %v2515_v23  ;;  %2171 = vmatpush3.bf16.msra.mxu0 %v2519_v25  ;;  %v90_v36 = vmin.f32 %v56_v22, 0.0  ;;  %v2541_v37 = vsub.f32 %v72_v12, %v750_v20  ;;  %v91_v38 = vmin.f32 %v57_v26, 0.0  ;;  %v74_v39 = vmax.f32 %v56_v22, 0.0  ;;  %v65_v20 = vld [vmem:[#allocation2 + $0x68] sm:$0xff] }
  0x3f   :  { %3149 = vst [vmem:[#allocation14_spill] sm:$0xff] %v2527_v30  ;;  %3150 = vst [vmem:[#allocation15_spill] sm:$0xff] %v2537_v35  ;;  %2028 = vmatprep.subr.bf16.mxu1 %v3086_v0  ;;  %2172 = vmatprep.subr.bf16.mxu0 %v3086_v0  ;;  %v75_v40 = vmax.f32 %v57_v26, 0.0  ;;  %v92_v42 = vmin.f32 %v58_v31, 0.0  ;;  %v93_v43 = vmin.f32 %v2529_v32, 0.0  ;;  %v76_v44 = vmax.f32 %v58_v31, 0.0  ;;  %p2416_p13 = por %p2415_p12, %p2414_p11 }
  0x40   :  { %v115_v41 = vand.u32 4294901760, %v90_v36  ;;  %v118_v45 = vand.u32 4294901760, %v91_v38  ;;  %v756_v46 = vand.u32 4294901760, %v74_v39  ;;  %v77_v48 = vmax.f32 %v2529_v32, 0.0 }
  0x41   :  { %v759_v47 = vand.u32 4294901760, %v75_v40  ;;  %v2547_v49 = vsub.f32 %v73_v13, %v753_v21  ;;  %v121_v50 = vand.u32 4294901760, %v92_v42  ;;  %v124_v51 = vand.u32 4294901760, %v93_v43  ;;  %p2417_p0 = pnand %p2416_p13, %p2410_p10 }
  0x42   :  { %2030 = vmatpush3.bf16.msra.mxu1 %v2527_v30  ;;  %2174 = vmatpush3.bf16.msra.mxu0 %v2537_v35  ;;  %v762_v52 = vand.u32 4294901760, %v76_v44  ;;  %v2551_v53 = vpack.c.bf16 %v118_v45, %v115_v41  ;;  %v2553_v54 = vsub.f32 %v90_v36, %v115_v41  ;;  %v765_v56 = vand.u32 4294901760, %v77_v48 }
  0x43   :  { %2031 = vmatprep.subr.bf16.mxu1 %v3086_v0  ;;  %2175 = vmatprep.subr.bf16.mxu0 %v3086_v0  ;;  %v2555_v55 = vpack.c.bf16 %v759_v47, %v756_v46  ;;  %v2557_v59 = vsub.f32 %v91_v38, %v118_v45  ;;  %v2559_v60 = vsub.f32 %v74_v39, %v756_v46  ;;  %v94_v7 = vmin.f32 %v60_v57, 0.0  ;;  %v2593_v45 = vld [vmem:[#allocation2 + $0x78] sm:$0xff] }
  0x44   :  { %3151 = vst [vmem:[#allocation16_spill] sm:$0xff] %v2551_v53  ;;  %v2561_v61 = vsub.f32 %v75_v40, %v759_v47  ;;  %v2563_v62 = vpack.c.bf16 %v124_v51, %v121_v50  ;;  %v2565_v3 = vsub.f32 %v92_v42, %v121_v50  ;;  %v2567_v4 = vsub.f32 %v93_v43, %v124_v51 }
  0x45   :  { %3152 = vst [vmem:[#allocation17_spill] sm:$0xff] %v2555_v55  ;;  %v2569_v5 = vpack.c.bf16 %v765_v56, %v762_v52  ;;  %v2571_v6 = vsub.f32 %v76_v44, %v762_v52  ;;  %v95_v8 = vmin.f32 %v61_v58, 0.0  ;;  %v78_v9 = vmax.f32 %v60_v57, 0.0  ;;  %v66_v44 = vld [vmem:[#allocation2 + $0x70] sm:$0xff] }
  0x46   :  { %3153 = vst [vmem:[#allocation18_spill] sm:$0xff] %v2563_v62  ;;  %2033 = vmatpush3.bf16.msra.mxu1 %v2551_v53  ;;  %2177 = vmatpush3.bf16.msra.mxu0 %v2555_v55  ;;  %v79_v10 = vmax.f32 %v61_v58, 0.0  ;;  %v96_v11 = vmin.f32 %v62_v63, 0.0  ;;  %v97_v12 = vmin.f32 %v63_v2, 0.0  ;;  %v80_v13 = vmax.f32 %v62_v63, 0.0 }
  0x47   :  { %3154 = vst [vmem:[#allocation19_spill] sm:$0xff] %v2569_v5  ;;  %2034 = vmatprep.subr.bf16.mxu1 %v3086_v0  ;;  %2178 = vmatprep.subr.bf16.mxu0 %v3086_v0  ;;  %v81_v14 = vmax.f32 %v63_v2, 0.0  ;;  %v127_v16 = vand.u32 4294901760, %v94_v7  ;;  %v130_v17 = vand.u32 4294901760, %v95_v8  ;;  %v768_v18 = vand.u32 4294901760, %v78_v9 }
  0x48   :  { %v771_v19 = vand.u32 4294901760, %v79_v10  ;;  %v133_v21 = vand.u32 4294901760, %v96_v11  ;;  %v136_v22 = vand.u32 4294901760, %v97_v12  ;;  %v774_v26 = vand.u32 4294901760, %v80_v13 }
  0x49   :  { %v777_v31 = vand.u32 4294901760, %v81_v14  ;;  %v2579_v32 = vsub.f32 %v77_v48, %v765_v56  ;;  %v2581_v36 = vpack.c.bf16 %v130_v17, %v127_v16  ;;  %v2583_v38 = vsub.f32 %v94_v7, %v127_v16 }
  0x4a   :  { %2036 = vmatpush3.bf16.msra.mxu1 %v2563_v62  ;;  %2180 = vmatpush3.bf16.msra.mxu0 %v2569_v5  ;;  %v98_v39 = vmin.f32 %v64_v15, 0.0  ;;  %v2587_v40 = vsub.f32 %v95_v8, %v130_v17  ;;  %v2589_v41 = vpack.c.bf16 %v771_v19, %v768_v18  ;;  %v2591_v42 = vsub.f32 %v78_v9, %v768_v18  ;;  %v69_v8 = vld [vmem:[#allocation7] sm:$0xff] }
  0x4b   :  { %3155 = vst [vmem:[#allocation20_spill] sm:$0xff] %v2581_v36  ;;  %2037 = vmatprep.subr.bf16.mxu1 %v3086_v0  ;;  %2181 = vmatprep.subr.bf16.mxu0 %v3086_v0  ;;  %v99_v43 = vmin.f32 %v65_v20, 0.0  ;;  %v2595_v46 = vsub.f32 %v79_v10, %v771_v19  ;;  %v2597_v47 = vpack.c.bf16 %v136_v22, %v133_v21  ;;  %v82_v58 = vmax.f32 %v64_v15, 0.0 }
  0x4c   :  { %3156 = vst [vmem:[#allocation21_spill] sm:$0xff] %v2589_v41  ;;  %v2599_v48 = vsub.f32 %v96_v11, %v133_v21  ;;  %v2601_v50 = vsub.f32 %v97_v12, %v136_v22  ;;  %v2603_v51 = vpack.c.bf16 %v777_v31, %v774_v26  ;;  %v2605_v52 = vsub.f32 %v80_v13, %v774_v26 }
  0x4d   :  { %3157 = vst [vmem:[#allocation22_spill] sm:$0xff] %v2597_v47  ;;  %v139_v56 = vand.u32 4294901760, %v98_v39  ;;  %v142_v57 = vand.u32 4294901760, %v99_v43  ;;  %v83_v63 = vmax.f32 %v65_v20, 0.0  ;;  %v100_v2 = vmin.f32 %v66_v44, 0.0 }
  0x4e   :  { %3158 = vst [vmem:[#allocation23_spill] sm:$0xff] %v2603_v51  ;;  %2039 = vmatpush3.bf16.msra.mxu1 %v2581_v36  ;;  %2183 = vmatpush3.bf16.msra.mxu0 %v2589_v41  ;;  %v101_v7 = vmin.f32 %v2593_v45, 0.0  ;;  %v2612_v9 = vsub.f32 %v81_v14, %v777_v31  ;;  %v84_v12 = vmax.f32 %v66_v44, 0.0  ;;  %v780_v13 = vand.u32 4294901760, %v82_v58 }
  0x4f   :  { %2040 = vmatprep.subr.bf16.mxu1 %v3086_v0  ;;  %2184 = vmatprep.subr.bf16.mxu0 %v3086_v0  ;;  %v2614_v10 = vpack.c.bf16 %v142_v57, %v139_v56  ;;  %v2616_v11 = vsub.f32 %v98_v39, %v139_v56  ;;  %v783_v16 = vand.u32 4294901760, %v83_v63  ;;  %v145_v17 = vand.u32 4294901760, %v100_v2  ;;  %v68_v39 = vld [vmem:[#allocation5] sm:$0xff] }
  0x50   :  { %v148_v15 = vand.u32 4294901760, %v101_v7  ;;  %v3082_v18 = vmax.f32 %v2593_v45, 0.0  ;;  %v786_v19 = vand.u32 4294901760, %v84_v12  ;;  %v2619_v20 = vand.u32 4294901760, %v69_v8 }
  0x51   :  { %3159 = vst [vmem:[#allocation24_spill] sm:$0xff] %v2614_v10  ;;  %v3081_v21 = vand.u32 4294901760, %v2517_v24  ;;  %v2624_v14 = vsub.f32 %v99_v43, %v142_v57  ;;  %v2626_v22 = vpack.c.bf16 %v783_v16, %v780_v13  ;;  %v2628_v26 = vsub.f32 %v82_v58, %v780_v13 }
  0x52   :  { %2042 = vmatpush3.bf16.msra.mxu1 %v2597_v47  ;;  %2186 = vmatpush3.bf16.msra.mxu0 %v2603_v51  ;;  %v3083_v31 = vand.u32 4294901760, %v2521_v27  ;;  %v2633_v44 = vsub.f32 %v83_v63, %v783_v16  ;;  %v2635_v56 = vpack.c.bf16 %v148_v15, %v145_v17  ;;  %v2637_v1 = vsub.f32 %v100_v2, %v145_v17 }
  0x53   :  { %3160 = vst [vmem:[#allocation25_spill] sm:$0xff] %v2626_v22  ;;  %2043 = vmatprep.subr.bf16.mxu1 %v3086_v0  ;;  %2187 = vmatprep.subr.bf16.mxu0 %v3086_v0  ;;  %v2641_v43 = vand.u32 4294901760, %v3082_v18  ;;  %v2643_v57 = vsub.f32 %v101_v7, %v148_v15  ;;  %v2646_v58 = vsub.f32 %v69_v8, %v2619_v20  ;;  %v2659_v17 = vand.u32 4294901760, %v68_v39 }
  0x54   :  { %3161 = vst [vmem:[#allocation26_spill] sm:$0xff] %v2635_v56  ;;  %v197_v13 = vsub.f32 %v2517_v24, %v3081_v21  ;;  %v204_v63 = vsub.f32 %v2521_v27, %v3083_v31  ;;  %v2657_v16 = vsub.f32 %v84_v12, %v786_v19  ;;  %v3092_v7 = vand.u32 4294901760, %v2523_v28 }
  0x55   :  { %3162 = vst [vmem:[#allocation27_spill] sm:$0xff] %v2646_v58  ;;  %v2655_v2 = vpack.c.bf16 %v2641_v43, %v786_v19  ;;  %v3095_v8 = vand.u32 4294901760, %v2646_v58  ;;  %v3096_v18 = vand.u32 4294901760, %v2525_v29  ;;  %v2669_v12 = vsub.f32 %v68_v39, %v2659_v17 }
  0x56   :  { %2045 = vmatpush3.bf16.msra.mxu1 %v2614_v10  ;;  %2189 = vmatpush3.bf16.msra.mxu0 %v2626_v22  ;;  %v198_v15 = vand.u32 4294901760, %v197_v13  ;;  %v205_v21 = vand.u32 4294901760, %v204_v63  ;;  %v838_v19 = vsub.f32 %v2523_v28, %v3092_v7  ;;  %v3098_v31 = vand.u32 4294901760, %v2533_v33 }
  0x57   :  { %3163 = vst [vmem:[#allocation28_spill] sm:$0xff] %v2655_v2  ;;  %2046 = vmatprep.subr.bf16.mxu1 %v3086_v0  ;;  %2190 = vmatprep.subr.bf16.mxu0 %v3086_v0  ;;  %3164 = vst [vmem:[#allocation29_spill] sm:$0xff] %v2669_v12  ;;  %v3097_v22 = vand.u32 4294901760, %v2535_v34  ;;  %v186_v13 = vsub.f32 %v2646_v58, %v3095_v8  ;;  %v845_v0 = vsub.f32 %v2525_v29, %v3096_v18  ;;  %v3165_v18 = vmov 0.0|0.0  }
  0x58   :  { %v2050_v63 = vpack.c.bf16 %v205_v21, %v198_v15  ;;  %v3103_v39 = vand.u32 4294901760, %v2541_v37  ;;  %v3112_v10 = vand.u32 4294901760, %v2669_v12  ;;  %v839_v51 = vand.u32 4294901760, %v838_v19 }
  0x59   :  { %v211_v7 = vsub.f32 %v2533_v33, %v3098_v31  ;;  %v218_v47 = vsub.f32 %v2535_v34, %v3097_v22  ;;  %v187_v21 = vand.u32 4294901760, %v186_v13  ;;  %v846_v15 = vand.u32 4294901760, %v845_v0 }
  0x5a   :  { %2048 = vmatpush3.bf16.msra.mxu1 %v2635_v56  ;;  %2192 = vmatpush3.bf16.msra.mxu0 %v2655_v2  ;;  %v852_v8 = vsub.f32 %v2541_v37, %v3103_v39  ;;  %v3119_v19 = vand.u32 4294901760, %v2547_v49  ;;  %v827_v22 = vsub.f32 %v2669_v12, %v3112_v10  ;;  %v3117_v2 = vand.u32 4294901760, %v2553_v54 }
  0x5b   :  { %2049 = vmatprep.subr.bf16.mxu1 %v3165_v18  ;;  %2193 = vmatprep.subr.bf16.mxu0 %v3165_v18  ;;  %v212_v31 = vand.u32 4294901760, %v211_v7  ;;  %v219_v56 = vand.u32 4294901760, %v218_v47  ;;  %v2194_v13 = vpack.c.bf16 %v846_v15, %v839_v51  ;;  %v3113_v41 = vand.u32 4294901760, %v2557_v59 }
  0x5c   :  { %v853_v0 = vand.u32 4294901760, %v852_v8  ;;  %v859_v39 = vsub.f32 %v2547_v49, %v3119_v19  ;;  %v828_v36 = vand.u32 4294901760, %v827_v22  ;;  %v225_v62 = vsub.f32 %v2553_v54, %v3117_v2 }
  0x5d   :  { %1638 = vmatmul.mubr.f32.vlgmr.msra.gmra.mrb[0].mxu1 %v187_v21  ;;  %v2053_v5 = vpack.c.bf16 %v219_v56, %v212_v31  ;;  %v3116_v7 = vand.u32 4294901760, %v2559_v60  ;;  %v232_v51 = vsub.f32 %v2557_v59, %v3113_v41  ;;  %v3114_v8 = vand.u32 4294901760, %v2561_v61 }
  0x5e   :  { %2051 = vmatpush3.bf16.msra.mxu1 %v2050_v63  ;;  %v860_v47 = vand.u32 4294901760, %v859_v39  ;;  %v3115_v15 = vand.u32 4294901760, %v2565_v3  ;;  %v3166_v10 = vmov 0.0   ;;  %1848 = vmatmul.mubr.f32.vlgmr.msra.gmra.mrb[0].mxu0 %v828_v36  ;;  %v226_v22 = vand.u32 4294901760, %v225_v62 }
  0x5f   :  { %1672 = vmatprep.mubr.msk.f32.mxu1 %vm2443_vm0, %v3166_v10  ;;  %2052 = vmatprep.subr.bf16.mxu1 %v3165_v18  ;;  %v866_v31 = vsub.f32 %v2559_v60, %v3116_v7  ;;  %v3118_v56 = vand.u32 4294901760, %v2567_v4  ;;  %v3120_v63 = vand.u32 4294901760, %v2571_v6  ;;  %v233_v21 = vand.u32 4294901760, %v232_v51 }
  0x60   :  { %2195 = vmatpush3.bf16.msra.mxu0 %v2194_v13  ;;  %v2197_v39 = vpack.c.bf16 %v860_v47, %v853_v0  ;;  %v873_v41 = vsub.f32 %v2561_v61, %v3114_v8  ;;  %v239_v36 = vsub.f32 %v2565_v3, %v3115_v15  ;;  %1882 = vmatprep.mubr.msk.f32.mxu0 %vm2443_vm0, %v3166_v10  ;;  %v3125_v47 = vand.u32 4294901760, %v2579_v32 }
  0x61   :  { %2196 = vmatprep.subr.bf16.mxu0 %v3165_v18  ;;  %v867_v62 = vand.u32 4294901760, %v866_v31  ;;  %v246_v13 = vsub.f32 %v2567_v4, %v3118_v56  ;;  %v880_v0 = vsub.f32 %v2571_v6, %v3120_v63  ;;  %v2056_v51 = vpack.c.bf16 %v233_v21, %v226_v22 }
  0x62   :  { %2054 = vmatpush3.bf16.msra.mxu1 %v2053_v5  ;;  %v874_v8 = vand.u32 4294901760, %v873_v41  ;;  %v240_v15 = vand.u32 4294901760, %v239_v36  ;;  %v3121_v7 = vand.u32 4294901760, %v2583_v38  ;;  %v887_v56 = vsub.f32 %v2579_v32, %v3125_v47 }
  0x63   :  { %2055 = vmatprep.subr.bf16.mxu1 %v3165_v18  ;;  %v247_v2 = vand.u32 4294901760, %v246_v13  ;;  %v881_v31 = vand.u32 4294901760, %v880_v0  ;;  %v3122_v19 = vand.u32 4294901760, %v2587_v40  ;;  %v3123_v41 = vand.u32 4294901760, %v2591_v42 }
  0x64   :  { %2198 = vmatpush3.bf16.msra.mxu0 %v2197_v39  ;;  %v2200_v63 = vpack.c.bf16 %v874_v8, %v867_v62  ;;  %v253_v5 = vsub.f32 %v2583_v38, %v3121_v7  ;;  %v3124_v22 = vand.u32 4294901760, %v2595_v46  ;;  %v888_v36 = vand.u32 4294901760, %v887_v56 }
  0x65   :  { %2199 = vmatprep.subr.bf16.mxu0 %v3165_v18  ;;  %v2059_v21 = vpack.c.bf16 %v247_v2, %v240_v15  ;;  %v260_v13 = vsub.f32 %v2587_v40, %v3122_v19  ;;  %v3130_v0 = vand.u32 4294901760, %v2599_v48  ;;  %v894_v39 = vsub.f32 %v2591_v42, %v3123_v41 }
  0x66   :  { %2057 = vmatpush3.bf16.msra.mxu1 %v2056_v51  ;;  %v254_v8 = vand.u32 4294901760, %v253_v5  ;;  %v901_v62 = vsub.f32 %v2595_v46, %v3124_v22  ;;  %v3126_v7 = vand.u32 4294901760, %v2601_v50  ;;  %v2203_v2 = vpack.c.bf16 %v888_v36, %v881_v31 }
  0x67   :  { %2058 = vmatprep.subr.bf16.mxu1 %v3165_v18  ;;  %v261_v15 = vand.u32 4294901760, %v260_v13  ;;  %v267_v56 = vsub.f32 %v2599_v48, %v3130_v0  ;;  %v3127_v51 = vand.u32 4294901760, %v2605_v52  ;;  %v895_v5 = vand.u32 4294901760, %v894_v39 }
  0x68   :  { %2201 = vmatpush3.bf16.msra.mxu0 %v2200_v63  ;;  %v902_v19 = vand.u32 4294901760, %v901_v62  ;;  %v274_v41 = vsub.f32 %v2601_v50, %v3126_v7  ;;  %v3128_v22 = vand.u32 4294901760, %v2612_v9  ;;  %v3167_v47 = vmax.f32 %v2593_v45, 0.0 }
  0x69   :  { %2202 = vmatprep.subr.bf16.mxu0 %v3165_v18  ;;  %v268_v36 = vand.u32 4294901760, %v267_v56  ;;  %v908_v63 = vsub.f32 %v2605_v52, %v3127_v51  ;;  %v3129_v13 = vand.u32 4294901760, %v2616_v11  ;;  %v2062_v39 = vpack.c.bf16 %v261_v15, %v254_v8 }
  0x6a   :  { %v2774_v31 = vsub.f32 %v3167_v47, %v2641_v43  ;;  %2060 = vmatpush3.bf16.msra.mxu1 %v2059_v21  ;;  %v275_v62 = vand.u32 4294901760, %v274_v41  ;;  %v915_v7 = vsub.f32 %v2612_v9, %v3128_v22  ;;  %v287_v45 = vand.u32 4294901760, %v2624_v14 }
  0x6b   :  { %2061 = vmatprep.subr.bf16.mxu1 %v3165_v18  ;;  %v2206_v43 = vpack.c.bf16 %v902_v19, %v895_v5  ;;  %v281_v47 = vsub.f32 %v2616_v11, %v3129_v13  ;;  %v921_v56 = vand.u32 4294901760, %v2628_v26  ;;  %v928_v51 = vand.u32 4294901760, %v2633_v44 }
  0x6c   :  { %2204 = vmatpush3.bf16.msra.mxu0 %v2203_v2  ;;  %v909_v21 = vand.u32 4294901760, %v908_v63  ;;  %v916_v41 = vand.u32 4294901760, %v915_v7  ;;  %v288_v8 = vsub.f32 %v2624_v14, %v287_v45  ;;  %v294_v15 = vand.u32 4294901760, %v2637_v1 }
  0x6d   :  { %2205 = vmatprep.subr.bf16.mxu0 %v3165_v18  ;;  %v2065_v22 = vpack.c.bf16 %v275_v62, %v268_v36  ;;  %v922_v19 = vsub.f32 %v2628_v26, %v921_v56  ;;  %v929_v5 = vsub.f32 %v2633_v44, %v928_v51  ;;  %v301_v13 = vand.u32 4294901760, %v2643_v57 }
  0x6e   :  { %2063 = vmatpush3.bf16.msra.mxu1 %v2062_v39  ;;  %v282_v0 = vand.u32 4294901760, %v281_v47  ;;  %v289_v55 = vand.u32 4294901760, %v288_v8  ;;  %v295_v2 = vsub.f32 %v2637_v1, %v294_v15  ;;  %v935_v7 = vand.u32 4294901760, %v2657_v16 }
  0x6f   :  { %2064 = vmatprep.subr.bf16.mxu1 %v3165_v18  ;;  %v302_v63 = vsub.f32 %v2643_v57, %v301_v13  ;;  %v942_v53 = vand.u32 4294901760, %v2774_v31  ;;  %v2209_v36 = vpack.c.bf16 %v916_v41, %v909_v21  ;;  %v923_v62 = vand.u32 4294901760, %v922_v19 }
  0x70   :  { %2207 = vmatpush3.bf16.msra.mxu0 %v2206_v43  ;;  %v930_v35 = vand.u32 4294901760, %v929_v5  ;;  %v936_v30 = vsub.f32 %v2657_v16, %v935_v7  ;;  %v2068_v47 = vpack.c.bf16 %v289_v55, %v282_v0  ;;  %v296_v8 = vand.u32 4294901760, %v295_v2 }
  0x71   :  { %2208 = vmatprep.subr.bf16.mxu0 %v3165_v18  ;;  %v943_v39 = vsub.f32 %v2774_v31, %v942_v53  ;;  %v303_v25 = vand.u32 4294901760, %v302_v63  ;;  %v3168_v41 = vand.u32 4294901760, %v2517_v24  ;;  %v3169_v19 = vand.u32 4294901760, %v2521_v27 }
  0x72   :  { %2066 = vmatpush3.bf16.msra.mxu1 %v2065_v22  ;;  %v937_v12 = vand.u32 4294901760, %v936_v30  ;;  %v2212_v58 = vpack.c.bf16 %v930_v35, %v923_v62  ;;  %v3170_v55 = vand.u32 4294901760, %v2523_v28  ;;  %v3171_v30 = vand.u32 4294901760, %v2525_v29 }
  0x73   :  { %2067 = vmatprep.subr.bf16.mxu1 %v3165_v18  ;;  %v944_v23 = vand.u32 4294901760, %v943_v39  ;;  %v2071_v43 = vpack.c.bf16 %v303_v25, %v296_v8  ;;  %v2811_v5 = vpack.c.bf16 %v3169_v19, %v3168_v41  ;;  %v3172_v35 = vand.u32 4294901760, %v2533_v33 }
  0x74   :  { %2210 = vmatpush3.bf16.msra.mxu0 %v2209_v36  ;;  %v2817_v22 = vpack.c.bf16 %v3171_v30, %v3170_v55  ;;  %v3173_v0 = vand.u32 4294901760, %v2535_v34  ;;  %v3176_v63 = vand.u32 4294901760, %v2553_v54  ;;  %v3177_v36 = vand.u32 4294901760, %v2557_v59 }
  0x75   :  { %2211 = vmatprep.subr.bf16.mxu0 %v3165_v18  ;;  %v2215_v21 = vpack.c.bf16 %v944_v23, %v937_v12  ;;  %v3174_v23 = vand.u32 4294901760, %v2541_v37  ;;  %v3175_v12 = vand.u32 4294901760, %v2547_v49  ;;  %v3178_v39 = vand.u32 4294901760, %v2559_v60 }
  0x76   :  { %2069 = vmatpush3.bf16.msra.mxu1 %v2068_v47  ;;  %v2824_v25 = vpack.c.bf16 %v3173_v0, %v3172_v35  ;;  %v2836_v62 = vpack.c.bf16 %v3177_v36, %v3176_v63  ;;  %v3179_v47 = vand.u32 4294901760, %v2561_v61  ;;  %v3180_v41 = vand.u32 4294901760, %v2565_v3 }
  0x77   :  { %2070 = vmatprep.subr.bf16.mxu1 %v3165_v18  ;;  %v2830_v2 = vpack.c.bf16 %v3175_v12, %v3174_v23  ;;  %v3181_v19 = vand.u32 4294901760, %v2567_v4  ;;  %v3182_v30 = vand.u32 4294901760, %v2571_v6  ;;  %v3183_v35 = vand.u32 4294901760, %v2579_v32 }
  0x78   :  { %v2842_v8 = vpack.c.bf16 %v3179_v47, %v3178_v39  ;;  %2213 = vmatpush3.bf16.msra.mxu0 %v2212_v58  ;;  %v3184_v23 = vand.u32 4294901760, %v2583_v38  ;;  %v3185_v12 = vand.u32 4294901760, %v2587_v40  ;;  %v3187_v58 = vand.u32 4294901760, %v2591_v42 }
  0x79   :  { %v2848_v55 = vpack.c.bf16 %v3181_v19, %v3180_v41  ;;  %v2854_v0 = vpack.c.bf16 %v3183_v35, %v3182_v30  ;;  %v3188_v36 = vand.u32 4294901760, %v2595_v46  ;;  %2214 = vmatprep.subr.bf16.mxu0 %v3165_v18  ;;  %v3190_v47 = vand.u32 4294901760, %v2599_v48 }
  0x7a   :  { %v2860_v63 = vpack.c.bf16 %v3185_v12, %v3184_v23  ;;  %v3191_v41 = vand.u32 4294901760, %v2601_v50  ;;  %v3192_v30 = vand.u32 4294901760, %v2605_v52  ;;  %v3193_v35 = vand.u32 4294901760, %v2612_v9  ;;  %2072 = vmatpush3.bf16.msra.mxu1 %v2071_v43 }
  0x7b   :  { %v2866_v39 = vpack.c.bf16 %v3188_v36, %v3187_v58  ;;  %v3194_v12 = vand.u32 4294901760, %v2616_v11  ;;  %v2885_v58 = vpack.c.bf16 %v928_v51, %v921_v56  ;;  %v2074_v36 = vpack.c.bf16 %v2521_v27, %v2517_v24  ;;  %2073 = vmatprep.subr.bf16.mxu1 %v3165_v18 }
  0x7c   :  { %3186 = vst [vmem:[#allocation30_spill] sm:$0xff] %v2860_v63  ;;  %v2873_v19 = vpack.c.bf16 %v3191_v41, %v3190_v47  ;;  %v2879_v23 = vpack.c.bf16 %v3193_v35, %v3192_v30  ;;  %v2891_v47 = vpack.c.bf16 %v942_v53, %v935_v7  ;;  %2216 = vmatpush3.bf16.msra.mxu0 %v2215_v21 }
  0x7d   :  { %3189 = vst [vmem:[#allocation31_spill] sm:$0xff] %v2866_v39  ;;  %v2883_v63 = vpack.c.bf16 %v287_v45, %v3194_v12  ;;  %v2889_v39 = vpack.c.bf16 %v301_v13, %v294_v15  ;;  %v2218_v41 = vpack.c.bf16 %v2525_v29, %v2523_v28  ;;  %2217 = vmatprep.subr.bf16.mxu0 %v3165_v18 }
  0x7e   :  { %1673 = vmatmul.mubr.f32.vlgmr.msra.gmra.mrb[0].mxu1 %v2619_v20  ;;  %v2077_v51 = vpack.c.bf16 %v2535_v34, %v2533_v33  ;;  %v2221_v24 = vpack.c.bf16 %v2547_v49, %v2541_v37  ;;  %v2080_v27 = vpack.c.bf16 %v2557_v59, %v2553_v54  ;;  %v2224_v28 = vpack.c.bf16 %v2561_v61, %v2559_v60 }
  0x7f   :  { %2075 = vmatpush3.bf16.msra.mxu1 %v2074_v36  ;;  %1707 = vmatprep.mubr.msk.f32.mxu1 %vm2443_vm0, %v3166_v10  ;;  %v2083_v29 = vpack.c.bf16 %v2567_v4, %v2565_v3  ;;  %v2227_v33 = vpack.c.bf16 %v2579_v32, %v2571_v6  ;;  %v2086_v34 = vpack.c.bf16 %v2587_v40, %v2583_v38  ;;  %v3195_v3 = vld [vmem:[#allocation27_spill] sm:$0xff]  ;;  %v3196_v4 = vld [vmem:[#allocation12_spill] sm:$0xff]  ;;  %v3198_v6 = vld [vmem:[#allocation13_spill] sm:$0xff] }
  0x80   :  { %1883 = vmatmul.mubr.f32.vlgmr.msra.gmra.mrb[0].mxu0 %v2659_v17  ;;  %2076 = vmatprep.subr.bf16.mxu1 %v3165_v18  ;;  %v2230_v37 = vpack.c.bf16 %v2595_v46, %v2591_v42  ;;  %v2089_v49 = vpack.c.bf16 %v2601_v50, %v2599_v48  ;;  %v2233_v53 = vpack.c.bf16 %v2612_v9, %v2605_v52  ;;  %v3199_v32 = vld [vmem:[#allocation14_spill] sm:$0xff]  ;;  %v3200_v38 = vld [vmem:[#allocation15_spill] sm:$0xff]  ;;  %v3201_v40 = vld [vmem:[#allocation16_spill] sm:$0xff] }
  0x81   :  { %2219 = vmatpush3.bf16.msra.mxu0 %v2218_v41  ;;  %1917 = vmatprep.mubr.msk.f32.mxu0 %vm2443_vm0, %v3166_v10  ;;  %v2092_v54 = vpack.c.bf16 %v2624_v14, %v2616_v11  ;;  %v2236_v59 = vpack.c.bf16 %v2633_v44, %v2628_v26  ;;  %v2095_v60 = vpack.c.bf16 %v2643_v57, %v2637_v1  ;;  %v3197_v1 = vld [vmem:[#allocation29_spill] sm:$0xff]  ;;  %v3203_v46 = vld [vmem:[#allocation18_spill] sm:$0xff]  ;;  %v3204_v48 = vld [vmem:[#allocation19_spill] sm:$0xff] }
  0x82   :  { %2220 = vmatprep.subr.bf16.mxu0 %v3165_v18  ;;  %v2239_v61 = vpack.c.bf16 %v2774_v31, %v2657_v16  ;;  %v3202_v42 = vld [vmem:[#allocation17_spill] sm:$0xff]  ;;  %v3205_v50 = vld [vmem:[#allocation20_spill] sm:$0xff]  ;;  %v3207_v9 = vld [vmem:[#allocation22_spill] sm:$0xff]  ;;  %v3213_v16 = vand.u32 4294901760, %v3195_v3  ;;  %v3214_v31 = vand.u32 4294901760, %v3197_v1 }
  0x83   :  { %2078 = vmatpush3.bf16.msra.mxu1 %v2077_v51  ;;  %v3206_v52 = vld [vmem:[#allocation21_spill] sm:$0xff]  ;;  %v3208_v11 = vld [vmem:[#allocation23_spill] sm:$0xff]  ;;  %v3209_v14 = vld [vmem:[#allocation24_spill] sm:$0xff] }
  0x84   :  { %2079 = vmatprep.subr.bf16.mxu1 %v3165_v18  ;;  %v3210_v26 = vld [vmem:[#allocation25_spill] sm:$0xff]  ;;  %v3211_v44 = vld [vmem:[#allocation26_spill] sm:$0xff]  ;;  %v3212_v57 = vld [vmem:[#allocation28_spill] sm:$0xff] }
  0x85   :  { %2222 = vmatpush3.bf16.msra.mxu0 %v2221_v24  ;;  %v3215_v13 = vld [vmem:[#allocation30_spill] sm:$0xff]  ;;  %v3216_v45 = vld [vmem:[#allocation31_spill] sm:$0xff] }
  0x86   :  { %2223 = vmatprep.subr.bf16.mxu0 %v3165_v18 }
  0x87   :  { %2081 = vmatpush3.bf16.msra.mxu1 %v2080_v27 }
  0x88   :  { %2082 = vmatprep.subr.bf16.mxu1 %v3165_v18 }
  0x89   :  { %2225 = vmatpush3.bf16.msra.mxu0 %v2224_v28 }
  0x8a   :  { %2226 = vmatprep.subr.bf16.mxu0 %v3165_v18 }
  0x8b   :  { %2084 = vmatpush3.bf16.msra.mxu1 %v2083_v29 }
  0x8c   :  { %2085 = vmatprep.subr.bf16.mxu1 %v3165_v18 }
  0x8d   :  { %2228 = vmatpush3.bf16.msra.mxu0 %v2227_v33 }
  0x8e   :  { %2229 = vmatprep.subr.bf16.mxu0 %v3165_v18 }
  0x8f   :  { %2087 = vmatpush3.bf16.msra.mxu1 %v2086_v34 }
  0x90   :  { %2088 = vmatprep.subr.bf16.mxu1 %v3165_v18 }
  0x91   :  { %2231 = vmatpush3.bf16.msra.mxu0 %v2230_v37 }
  0x92   :  { %2232 = vmatprep.subr.bf16.mxu0 %v3165_v18 }
  0x93   :  { %2090 = vmatpush3.bf16.msra.mxu1 %v2089_v49 }
  0x94   :  { %2091 = vmatprep.subr.bf16.mxu1 %v3165_v18 }
  0x95   :  { %2234 = vmatpush3.bf16.msra.mxu0 %v2233_v53 }
  0x96   :  { %2235 = vmatprep.subr.bf16.mxu0 %v3165_v18 }
  0x97   :  { %2093 = vmatpush3.bf16.msra.mxu1 %v2092_v54 }
  0x98   :  { %2094 = vmatprep.subr.bf16.mxu1 %v3165_v18 }
  0x99   :  { %2237 = vmatpush3.bf16.msra.mxu0 %v2236_v59 }
  0x9a   :  { %2238 = vmatprep.subr.bf16.mxu0 %v3165_v18 }
  0x9b   :  { %2096 = vmatpush3.bf16.msra.mxu1 %v2095_v60 }
  0x9c   :  { %2097 = vmatprep.subr.bf16.mxu1 %v3165_v18 }
  0x9d   :  { %2240 = vmatpush3.bf16.msra.mxu0 %v2239_v61 }
  0x9e   :  { %2241 = vmatprep.subr.bf16.mxu0 %v3165_v18  ;;  %1708 = vmatmul.mubr.f32.vlgmr.msra.gmra.mrb[0].mxu1 %v3195_v3 }
  0x9f   :  { %2099 = vmatpush3.bf16.msra.mxu1 %v3196_v4  ;;  %1742 = vmatprep.mubr.msk.f32.mxu1 %vm2443_vm0, %v3166_v10 }
  0xa0   :  { %1918 = vmatmul.mubr.f32.vlgmr.msra.gmra.mrb[0].mxu0 %v3197_v1  ;;  %2100 = vmatprep.subr.bf16.mxu1 %v3165_v18 }
  0xa1   :  { %2243 = vmatpush3.bf16.msra.mxu0 %v3198_v6  ;;  %1952 = vmatprep.mubr.msk.f32.mxu0 %vm2443_vm0, %v3166_v10 }
  0xa2   :  { %2244 = vmatprep.subr.bf16.mxu0 %v3165_v18 }
  0xa3   :  { %2102 = vmatpush3.bf16.msra.mxu1 %v3199_v32 }
  0xa4   :  { %2103 = vmatprep.subr.bf16.mxu1 %v3165_v18 }
  0xa5   :  { %2246 = vmatpush3.bf16.msra.mxu0 %v3200_v38 }
  0xa6   :  { %2247 = vmatprep.subr.bf16.mxu0 %v3165_v18 }
  0xa7   :  { %2105 = vmatpush3.bf16.msra.mxu1 %v3201_v40 }
  0xa8   :  { %2106 = vmatprep.subr.bf16.mxu1 %v3165_v18 }
  0xa9   :  { %2249 = vmatpush3.bf16.msra.mxu0 %v3202_v42 }
  0xaa   :  { %2250 = vmatprep.subr.bf16.mxu0 %v3165_v18 }
  0xab   :  { %2108 = vmatpush3.bf16.msra.mxu1 %v3203_v46 }
  0xac   :  { %2109 = vmatprep.subr.bf16.mxu1 %v3165_v18 }
  0xad   :  { %2252 = vmatpush3.bf16.msra.mxu0 %v3204_v48 }
  0xae   :  { %2253 = vmatprep.subr.bf16.mxu0 %v3165_v18 }
  0xaf   :  { %2111 = vmatpush3.bf16.msra.mxu1 %v3205_v50 }
  0xb0   :  { %2112 = vmatprep.subr.bf16.mxu1 %v3165_v18 }
  0xb1   :  { %2255 = vmatpush3.bf16.msra.mxu0 %v3206_v52 }
  0xb2   :  { %2256 = vmatprep.subr.bf16.mxu0 %v3165_v18 }
  0xb3   :  { %2114 = vmatpush3.bf16.msra.mxu1 %v3207_v9 }
  0xb4   :  { %2115 = vmatprep.subr.bf16.mxu1 %v3165_v18 }
  0xb5   :  { %2258 = vmatpush3.bf16.msra.mxu0 %v3208_v11 }
  0xb6   :  { %2259 = vmatprep.subr.bf16.mxu0 %v3165_v18 }
  0xb7   :  { %2117 = vmatpush3.bf16.msra.mxu1 %v3209_v14 }
  0xb8   :  { %2118 = vmatprep.subr.bf16.mxu1 %v3165_v18 }
  0xb9   :  { %2261 = vmatpush3.bf16.msra.mxu0 %v3210_v26 }
  0xba   :  { %2262 = vmatprep.subr.bf16.mxu0 %v3165_v18 }
  0xbb   :  { %2120 = vmatpush3.bf16.msra.mxu1 %v3211_v44 }
  0xbc   :  { %2121 = vmatprep.subr.bf16.mxu1 %v3165_v18 }
  0xbd   :  { %2264 = vmatpush3.bf16.msra.mxu0 %v3212_v57 }
  0xbe   :  { %2265 = vmatprep.subr.bf16.mxu0 %v3165_v18  ;;  %1743 = vmatmul.mubr.f32.vlgmr.msra.gmra.mrb[0].mxu1 %v3213_v16 }
  0xbf   :  { %2123 = vmatpush3.bf16.msra.mxu1 %v2811_v5  ;;  %1777 = vmatprep.mubr.msk.f32.mxu1 %vm2443_vm0, %v3166_v10 }
  0xc0   :  { %1953 = vmatmul.mubr.f32.vlgmr.msra.gmra.mrb[0].mxu0 %v3214_v31  ;;  %2124 = vmatprep.subr.bf16.mxu1 %v3165_v18 }
  0xc1   :  { %2267 = vmatpush3.bf16.msra.mxu0 %v2817_v22  ;;  %1987 = vmatprep.mubr.msk.f32.mxu0 %vm2443_vm0, %v3166_v10 }
  0xc2   :  { %2268 = vmatprep.subr.bf16.mxu0 %v3165_v18 }
  0xc3   :  { %2126 = vmatpush3.bf16.msra.mxu1 %v2824_v25 }
  0xc4   :  { %2127 = vmatprep.subr.bf16.mxu1 %v3165_v18 }
  0xc5   :  { %2270 = vmatpush3.bf16.msra.mxu0 %v2830_v2 }
  0xc6   :  { %2271 = vmatprep.subr.bf16.mxu0 %v3165_v18 }
  0xc7   :  { %2129 = vmatpush3.bf16.msra.mxu1 %v2836_v62 }
  0xc8   :  { %2130 = vmatprep.subr.bf16.mxu1 %v3165_v18 }
  0xc9   :  { %2273 = vmatpush3.bf16.msra.mxu0 %v2842_v8 }
  0xca   :  { %2274 = vmatprep.subr.bf16.mxu0 %v3165_v18 }
  0xcb   :  { %2132 = vmatpush3.bf16.msra.mxu1 %v2848_v55 }
  0xcc   :  { %2133 = vmatprep.subr.bf16.mxu1 %v3165_v18 }
  0xcd   :  { %2276 = vmatpush3.bf16.msra.mxu0 %v2854_v0 }
  0xce   :  { %2277 = vmatprep.subr.bf16.mxu0 %v3165_v18 }
  0xcf   :  { %2135 = vmatpush3.bf16.msra.mxu1 %v3215_v13 }
  0xd0   :  { %2136 = vmatprep.subr.bf16.mxu1 %v3165_v18 }
  0xd1   :  { %2279 = vmatpush3.bf16.msra.mxu0 %v3216_v45 }
  0xd2   :  { %2280 = vmatprep.subr.bf16.mxu0 %v3165_v18 }
  0xd3   :  { %2138 = vmatpush3.bf16.msra.mxu1 %v2873_v19 }
  0xd4   :  { %2139 = vmatprep.subr.bf16.mxu1 %v3165_v18 }
  0xd5   :  { %2282 = vmatpush3.bf16.msra.mxu0 %v2879_v23 }
  0xd6   :  { %2283 = vmatprep.subr.bf16.mxu0 %v3165_v18 }
  0xd7   :  { %2141 = vmatpush3.bf16.msra.mxu1 %v2883_v63 }
  0xd8   :  { %2142 = vmatprep.subr.bf16.mxu1 %v3165_v18 }
  0xd9   :  { %2285 = vmatpush3.bf16.msra.mxu0 %v2885_v58 }
  0xda   :  { %2286 = vmatprep.subr.bf16.mxu0 %v3165_v18 }
  0xdb   :  { %2144 = vmatpush3.bf16.msra.mxu1 %v2889_v39 }
  0xdc   :  { %2145 = vmatprep.subr.bf16.mxu1 %v3165_v18 }
  0xdd   :  { %2288 = vmatpush3.bf16.msra.mxu0 %v2891_v47 }
  0xde   :  { %2289 = vmatprep.subr.bf16.mxu0 %v3165_v18  ;;  %1778 = vmatmul.mubr.f32.vlgmr.msra.gmra.mrb[0].mxu1 %v2619_v20 }
  0xdf   :  { %2147 = vmatpush3.bf16.msra.mxu1 %v3196_v4  ;;  %1812 = vmatprep.mubr.msk.f32.mxu1 %vm2443_vm0, %v3166_v10 }
  0xe0   :  { %1988 = vmatmul.mubr.f32.vlgmr.msra.gmra.mrb[0].mxu0 %v2659_v17  ;;  %2148 = vmatprep.subr.bf16.mxu1 %v3165_v18 }
  0xe1   :  { %2291 = vmatpush3.bf16.msra.mxu0 %v3198_v6  ;;  %2022 = vmatprep.mubr.msk.f32.mxu0 %vm2443_vm0, %v3166_v10 }
  0xe2   :  { %2292 = vmatprep.subr.bf16.mxu0 %v3165_v18 }
  0xe3   :  { %2150 = vmatpush3.bf16.msra.mxu1 %v3199_v32 }
  0xe4   :  { %2151 = vmatprep.subr.bf16.mxu1 %v3165_v18 }
  0xe5   :  { %2294 = vmatpush3.bf16.msra.mxu0 %v3200_v38 }
  0xe6   :  { %2295 = vmatprep.subr.bf16.mxu0 %v3165_v18 }
  0xe7   :  { %2153 = vmatpush3.bf16.msra.mxu1 %v3201_v40 }
  0xe8   :  { %2154 = vmatprep.subr.bf16.mxu1 %v3165_v18 }
  0xe9   :  { %2297 = vmatpush3.bf16.msra.mxu0 %v3202_v42 }
  0xea   :  { %2298 = vmatprep.subr.bf16.mxu0 %v3165_v18 }
  0xeb   :  { %2156 = vmatpush3.bf16.msra.mxu1 %v3203_v46 }
  0xec   :  { %2157 = vmatprep.subr.bf16.mxu1 %v3165_v18 }
  0xed   :  { %2300 = vmatpush3.bf16.msra.mxu0 %v3204_v48 }
  0xee   :  { %2301 = vmatprep.subr.bf16.mxu0 %v3165_v18 }
  0xef   :  { %2159 = vmatpush3.bf16.msra.mxu1 %v3205_v50 }
  0xf0   :  { %2160 = vmatprep.subr.bf16.mxu1 %v3165_v18 }
  0xf1   :  { %2303 = vmatpush3.bf16.msra.mxu0 %v3206_v52 }
  0xf2   :  { %2304 = vmatprep.subr.bf16.mxu0 %v3165_v18 }
  0xf3   :  { %2162 = vmatpush3.bf16.msra.mxu1 %v3207_v9 }
  0xf4   :  { %2163 = vmatprep.subr.bf16.mxu1 %v3165_v18 }
  0xf5   :  { %2306 = vmatpush3.bf16.msra.mxu0 %v3208_v11 }
  0xf6   :  { %2307 = vmatprep.subr.bf16.mxu0 %v3165_v18 }
  0xf7   :  { %2165 = vmatpush3.bf16.msra.mxu1 %v3209_v14 }
  0xf8   :  { %2166 = vmatprep.subr.bf16.mxu1 %v3165_v18 }
  0xf9   :  { %2309 = vmatpush3.bf16.msra.mxu0 %v3210_v26 }
  0xfa   :  { %2310 = vmatprep.subr.bf16.mxu0 %v3165_v18 }
  0xfb   :  { %2168 = vmatpush3.bf16.msra.mxu1 %v3211_v44 }
  0xfd   :  { %2312 = vmatpush3.bf16.msra.mxu0 %v3212_v57 }
  0xfe   :  { %1813 = vmatmul.mubr.f32.vlgmr.msra.gmra.mrb[0].mxu1 %v2619_v20 }
 0x100   :  { %2023 = vmatmul.mubr.f32.vlgmr.msra.gmra.mrb[0].mxu0 %v2659_v17 }
 0x1d1   :  { %v739_v10 = vpop.f32.mrb[0].mxu1 }
 0x1d2   :  { %v1814_v56 = vpop.f32.mrb[1].mxu1 }
 0x1d3   :  { %v1380_v15 = vpop.f32.mrb[0].mxu0 }
 0x1d4   :  { %v2313_v7 = vadd.f32 %v1380_v15, %v739_v10  ;;  %v2024_v43 = vpop.f32.mrb[1].mxu0 }
 0x1d6   :  { %1384 = vst [vmem:[#allocation8] sm:$0xff] %v2313_v7 }
 0x1d7   :  { %2420 = shalt.err (!%p2417_p0)
}
 0x1d8   :  { %s2421_s25 = scalar_lea.hbm %s3078_s3, 128 }
 0x1d9   :  { %p2422_p1 = scmp.ne.s32.totalorder %s3078_s3, %s2421_s25  ;;  %p2425_p2 = scmp.lt.u32.totalorder %s2421_s25, %s3078_s3 }
 0x1db   :  { %p2427_p3 = pnand %p2425_p2, %p2422_p1 }
 0x1dd   :  { %2430 = shalt.err (!%p2427_p3)
}
 0x1de   :  { %1394 = dma.vmem_to_hbm [thread:$0]  %s1392_s21, 128, %s3078_s3, [#allocation4]  }
 0x1df   :  { %2435 = dma.done.wait [#allocation4], 128  }
 0x1e0   :  { %2436 = vsyncadd [#allocation4], 4294967168 }
 0x1e1   :  { %1398 = vsyncpa [#allocation3], 1 }
 0x1e2   :  { %1399 = vsyncpa [#allocation6], 1 }
 0x1e3   :  { %1400 = vsyncpa [#allocation4], 1 }

</bundles_post_ra>
